<compile_context>
chip_gen: v7x
topology: tpu7x:2x2x1
jax: 0.10.0
libtpu: 0.0.40
codegen_flags: <defaults>
</compile_context>

<pallas_src>
import functools
import jax
import jax.numpy as jnp
from jax.experimental import pallas as pl
from jax.experimental.pallas import tpu as pltpu

_LANE = 128     # lane width (last-dim alignment)
_SUBLANE = 8    # f32 sublane (second-to-last dim alignment)
_TB_MAX = 256   # max batch tile (multiple of 8; sized well inside v7x 64 MiB VMEM)


def _round_up(x, m):
    return ((x + m - 1) // m) * m


# ---------------------------------------------------------------------------
# Activations (static Python callables, resolved at kernel trace time).
# ---------------------------------------------------------------------------
def _act_tanh(x):
    return jnp.tanh(x)


def _act_sigmoid(x):
    return jax.nn.sigmoid(x)


def _make_leaky_relu(negative_slope):
    def _f(x):
        return jnp.where(x >= 0, x, negative_slope * x)
    return _f


# ---------------------------------------------------------------------------
# Model spec: padded bf16 weights / f32 biases + static op program.
# ---------------------------------------------------------------------------
class _ModelSpec:
    def __init__(self, params, ops, input_size, output_size, trans_width):
        self.params = params            # [(w[in_pad,out_pad] bf16, b[1,out_pad] f32)]
        self.ops = ops                  # tuple of "linear" | activation callable
        self.input_size = input_size    # logical in_features of first Linear
        self.output_size = output_size  # logical out_features of last Linear
        self.trans_width = trans_width  # padded width touched by tanh/sigmoid (cost hint)
        self.in_pad = params[0][0].shape[0]
        self.out_pad = params[-1][0].shape[1]


def _build_model_spec(layers_list, key):
    params, ops = [], []
    input_size = output_size = None
    cur_out_pad = 0
    trans_width = 0
    for item in layers_list:
        kind = item["layer"]
        if kind == "Linear":
            in_f, out_f = item["in_features"], item["out_features"]
            in_pad = _round_up(max(in_f, 1), _LANE)
            out_pad = _round_up(max(out_f, 1), _LANE)
            key, sub = jax.random.split(key)
            # PyTorch weights_init_normal: weight[out,in] ~ N(0, 0.02), bias zeros.
            w_torch = 0.02 * jax.random.normal(sub, (out_f, in_f), dtype=jnp.float32)
            w = jnp.zeros((in_pad, out_pad), jnp.float32)
            w = w.at[:in_f, :out_f].set(jnp.transpose(w_torch)).astype(jnp.bfloat16)
            b = jnp.zeros((1, out_pad), jnp.float32)
            params.append((w, b))
            ops.append("linear")
            if input_size is None:
                input_size = in_f
            output_size = out_f
            cur_out_pad = out_pad
        elif kind == "LeakyReLU":
            ops.append(_make_leaky_relu(item["negative_slope"]))
        elif kind == "Tanh":
            ops.append(_act_tanh)
            trans_width += cur_out_pad
        elif kind == "Sigmoid":
            ops.append(_act_sigmoid)
            trans_width += cur_out_pad
        elif kind == "Dropout":
            pass  # eval-mode Dropout == identity
        elif kind == "BatchNorm1d":
            pass  # TODO(synk): BatchNorm1d batch statistics not fused here.
        elif kind in ("GCNConv", "GCNConv_Permute"):
            pass  # TODO(synk): GCNConv edge_index message passing not lowered.
    assert params, "model must contain at least one Linear layer"
    return _ModelSpec(params, tuple(ops), input_size, output_size, trans_width), key


# ---------------------------------------------------------------------------
# Fused kernel: runs one or more MLPs sequentially on a (TB, F) batch tile.
# All weights/biases are VMEM-resident across batch tiles; intermediates stay
# in vregs/VMEM. Matmuls in bf16 on the MXU, accumulation/bias/activations f32.
# ---------------------------------------------------------------------------
def _fused_gan_kernel(x_ref, *refs, model_ops, n_models):
    n_param_refs = len(refs) - n_models
    param_refs = refs[:n_param_refs]
    out_refs = refs[n_param_refs:]

    h = x_ref[...].astype(jnp.float32)
    p = 0
    for m in range(n_models):
        for op in model_ops[m]:
            if op == "linear":
                w = param_refs[2 * p][...]          # bf16 [in_pad, out_pad]
                b = param_refs[2 * p + 1][...]      # f32  [1, out_pad]
                h = jnp.dot(h.astype(jnp.bfloat16), w,
                            preferred_element_type=jnp.float32) + b
                p += 1
            else:
                h = op(h)                           # f32 elementwise / EUP
        out_refs[m][...] = h.astype(out_refs[m].dtype)


def _build_forward(specs, tb_max=_TB_MAX):
    """Returns a jitted fn: x [B, in_features] -> tuple of per-model outputs
    [B, out_features_m]. The models run back-to-back inside one pallas_call."""
    model_ops = tuple(s.ops for s in specs)
    flat_params = []
    for s in specs:
        for w, b in s.params:
            flat_params.append(w)
            flat_params.append(b)

    in_feat = specs[0].input_size
    in_pad = specs[0].in_pad
    out_feats = tuple(s.output_size for s in specs)
    out_pads = tuple(s.out_pad for s in specs)

    kernel = functools.partial(_fused_gan_kernel,
                               model_ops=model_ops, n_models=len(specs))

    param_bytes = sum(int(p.size) * p.dtype.itemsize for p in flat_params)
    flops_per_row = 2 * sum(int(w.shape[0]) * int(w.shape[1])
                            for s in specs for w, _ in s.params)
    trans_per_row = sum(s.trans_width for s in specs)

    def _fwd(x, *flat):
        B = x.shape[0]
        B_pad = _round_up(max(B, 1), _SUBLANE)
        TB = min(tb_max, B_pad)
        B_pad = _round_up(B_pad, TB)
        grid = (B_pad // TB,)

        xp = jnp.pad(x.astype(jnp.float32),
                     ((0, B_pad - B), (0, in_pad - x.shape[1])))

        in_specs = [pl.BlockSpec((TB, in_pad), lambda i: (i, 0))]
        for p in flat:                                   # weights/biases resident
            in_specs.append(pl.BlockSpec(p.shape, lambda i: (0, 0)))
        out_specs = tuple(pl.BlockSpec((TB, op), lambda i: (i, 0))
                          for op in out_pads)
        out_shape = tuple(jax.ShapeDtypeStruct((B_pad, op), jnp.float32)
                          for op in out_pads)

        io_tile_bytes = TB * in_pad * 4 + sum(TB * op * 4 for op in out_pads)
        vmem_limit = int(min(100 << 20,
                             max(16 << 20,
                                 2 * param_bytes + 4 * io_tile_bytes + (8 << 20))))

        cost = pl.CostEstimate(
            flops=int(flops_per_row * B_pad),
            transcendentals=int(trans_per_row * B_pad),
            bytes_accessed=int(param_bytes + B_pad * in_pad * 4
                               + sum(B_pad * op * 4 for op in out_pads)))

        outs = pl.pallas_call(
            kernel,
            out_shape=out_shape,
            grid_spec=pltpu.PrefetchScalarGridSpec(
                num_scalar_prefetch=0,
                grid=grid,
                in_specs=in_specs,
                out_specs=out_specs),
            compiler_params=pltpu.CompilerParams(
                dimension_semantics=("parallel",),
                vmem_limit_bytes=vmem_limit),
            cost_estimate=cost,
        )(xp, *flat)

        # Slice lane/sublane padding back off.
        return tuple(o[:B, :of] for o, of in zip(outs, out_feats))

    jitted = jax.jit(_fwd)

    def forward(x):
        return jitted(x, *flat_params)

    return forward


# ---------------------------------------------------------------------------
# JAX-side re-implementation of nn_Model / GenerativeAdversarialModels.
# ---------------------------------------------------------------------------
class NNModel:
    """JAX analogue of nn_Model: the whole (Linear + activation)* chain runs as
    one jitted, batch-tiled Pallas kernel."""

    def __init__(self, spec):
        self.spec = spec
        self.input_size = spec.input_size
        self.output_size = spec.output_size
        self._forward = _build_forward([spec])

    def forward(self, x):
        (y,) = self._forward(x)
        # Matches nn_Model.forward return structure (both keys hold the final x).
        return {"x_input": {"data": y}, "x_output": {"data": y}}


class GenerativeAdversarialModels:
    def __init__(self, layers_list, key):
        kg, kd = jax.random.split(key)
        g_spec, _ = _build_model_spec(layers_list["generator_layers"], kg)
        d_spec, _ = _build_model_spec(layers_list["discriminator_layers"], kd)

        self.models = {
            "generator": NNModel(g_spec),
            "discriminator": NNModel(d_spec),
        }
        self.models_size = {
            name: {"input_size": m.input_size, "output_size": m.output_size}
            for name, m in self.models.items()
        }
        # Fused G -> D path: one pallas_call, `fake` never leaves VMEM.
        self._gan_forward = _build_forward([g_spec, d_spec])

    def get_generator(self):
        return self.models["generator"]

    def get_discriminator(self):
        return self.models["discriminator"]

    def get_size(self):
        return self.models_size

    def forward_gan(self, z):
        """Fused generator->discriminator pass. Returns (fake, prob)."""
        fake, prob = self._gan_forward(z)
        return fake, prob


# ---------------------------------------------------------------------------
# Main: small deterministic GAN config, one fused forward through G then D.
# ---------------------------------------------------------------------------
if __name__ == "__main__":
    LATENT, HIDDEN, DATA, BATCH = 8, 32, 16, 2

    layers_list = {
        "generator_layers": [
            {"layer": "Linear", "in_features": LATENT, "out_features": HIDDEN},
            {"layer": "LeakyReLU", "negative_slope": 0.2},
            {"layer": "Linear", "in_features": HIDDEN, "out_features": DATA},
            {"layer": "Tanh"},
        ],
        "discriminator_layers": [
            {"layer": "Linear", "in_features": DATA, "out_features": HIDDEN},
            {"layer": "LeakyReLU", "negative_slope": 0.2},
            {"layer": "Linear", "in_features": HIDDEN, "out_features": 1},
            {"layer": "Sigmoid"},
        ],
    }

    key = jax.random.PRNGKey(0)
    key, k_model, k_z = jax.random.split(key, 3)

    gan = GenerativeAdversarialModels(layers_list, k_model)

    z = jax.random.normal(k_z, (BATCH, LATENT), dtype=jnp.float32)

    # Fused G -> D path (single pallas_call).
    fake, prob = gan.forward_gan(z)
    jax.block_until_ready(fake)
    jax.block_until_ready(prob)

    # Per-model path (matches the PyTorch usage pattern) for cross-checking.
    gen_out = gan.get_generator().forward(z)
    fake_sep = gen_out["x_output"]["data"]
    disc_out = gan.get_discriminator().forward(fake_sep)
    prob_sep = disc_out["x_output"]["data"]
    jax.block_until_ready(prob_sep)

    assert fake.shape == (BATCH, DATA)
    assert prob.shape == (BATCH, 1)
    assert bool(jnp.all(jnp.isfinite(fake)))
    assert bool(jnp.all((prob >= 0.0) & (prob <= 1.0)))
    assert bool(jnp.allclose(fake, fake_sep, atol=1e-5, rtol=1e-5))
    assert bool(jnp.allclose(prob, prob_sep, atol=1e-5, rtol=1e-5))

    print("KERNEL_OK")
</pallas_src>

<mosaic_0001>
module attributes {stable_mosaic.version = 11 : i64} {
  func.func @_fused_gan_kernel(%arg0: i32, %arg1: memref<8x128xf32, #tpu.memory_space<vmem>>, %arg2: memref<128x128xbf16, #tpu.memory_space<vmem>>, %arg3: memref<1x128xf32, #tpu.memory_space<vmem>>, %arg4: memref<128x128xbf16, #tpu.memory_space<vmem>>, %arg5: memref<1x128xf32, #tpu.memory_space<vmem>>, %arg6: memref<128x128xbf16, #tpu.memory_space<vmem>>, %arg7: memref<1x128xf32, #tpu.memory_space<vmem>>, %arg8: memref<128x128xbf16, #tpu.memory_space<vmem>>, %arg9: memref<1x128xf32, #tpu.memory_space<vmem>>, %arg10: memref<8x128xf32, #tpu.memory_space<vmem>>, %arg11: memref<8x128xf32, #tpu.memory_space<vmem>>) attributes {dimension_semantics = [#tpu.dimension_semantics<parallel>], iteration_bounds = array<i64: 1>, scalar_prefetch = 0 : i64, scratch_operands = 0 : i64, tpu.core_type = #tpu.core_type<tc>, window_params = [{transform_indices = @transform_0, window_bounds = array<i64: 8, 128>}, {pipeline_mode = #tpu.pipeline_mode<synchronous>, transform_indices = @transform_1, window_bounds = array<i64: 128, 128>}, {pipeline_mode = #tpu.pipeline_mode<synchronous>, transform_indices = @transform_2, window_bounds = array<i64: 1, 128>}, {pipeline_mode = #tpu.pipeline_mode<synchronous>, transform_indices = @transform_3, window_bounds = array<i64: 128, 128>}, {pipeline_mode = #tpu.pipeline_mode<synchronous>, transform_indices = @transform_4, window_bounds = array<i64: 1, 128>}, {pipeline_mode = #tpu.pipeline_mode<synchronous>, transform_indices = @transform_5, window_bounds = array<i64: 128, 128>}, {pipeline_mode = #tpu.pipeline_mode<synchronous>, transform_indices = @transform_6, window_bounds = array<i64: 1, 128>}, {pipeline_mode = #tpu.pipeline_mode<synchronous>, transform_indices = @transform_7, window_bounds = array<i64: 128, 128>}, {pipeline_mode = #tpu.pipeline_mode<synchronous>, transform_indices = @transform_8, window_bounds = array<i64: 1, 128>}, {transform_indices = @transform_9, window_bounds = array<i64: 8, 128>}, {transform_indices = @transform_10, window_bounds = array<i64: 8, 128>}]} {
    %c0 = arith.constant 0 : index
    %c0_0 = arith.constant 0 : index
    %0 = vector.load %arg1[%c0, %c0_0] : memref<8x128xf32, #tpu.memory_space<vmem>>, vector<8x128xf32>
    %c0_1 = arith.constant 0 : index
    %c0_2 = arith.constant 0 : index
    %1 = vector.load %arg2[%c0_1, %c0_2] : memref<128x128xbf16, #tpu.memory_space<vmem>>, vector<128x128xbf16>
    %c0_3 = arith.constant 0 : index
    %c0_4 = arith.constant 0 : index
    %2 = vector.load %arg3[%c0_3, %c0_4] : memref<1x128xf32, #tpu.memory_space<vmem>>, vector<1x128xf32>
    %3 = arith.truncf %0 : vector<8x128xf32> to vector<8x128xbf16>
    %cst = arith.constant dense<0.000000e+00> : vector<8x128xf32>
    %4 = tpu.matmul %3, %1, %cst {dimension_numbers = #tpu.dot_dimension_numbers<[1], [0], [0], [1], [0, 0, 1, 1], [], []>} : vector<8x128xbf16>, vector<128x128xbf16>, vector<8x128xf32> -> vector<8x128xf32>
    %5 = vector.broadcast %2 : vector<1x128xf32> to vector<8x128xf32>
    %6 = arith.addf %4, %5 : vector<8x128xf32>
    %cst_5 = arith.constant 0.000000e+00 : f32
    %7 = vector.broadcast %cst_5 : f32 to vector<8x128xf32>
    %8 = arith.cmpf oge, %6, %7 : vector<8x128xf32>
    %cst_6 = arith.constant 2.000000e-01 : f32
    %9 = vector.broadcast %cst_6 : f32 to vector<8x128xf32>
    %10 = arith.mulf %9, %6 : vector<8x128xf32>
    %11 = arith.select %8, %6, %10 : vector<8x128xi1>, vector<8x128xf32>
    %c0_7 = arith.constant 0 : index
    %c0_8 = arith.constant 0 : index
    %12 = vector.load %arg4[%c0_7, %c0_8] : memref<128x128xbf16, #tpu.memory_space<vmem>>, vector<128x128xbf16>
    %c0_9 = arith.constant 0 : index
    %c0_10 = arith.constant 0 : index
    %13 = vector.load %arg5[%c0_9, %c0_10] : memref<1x128xf32, #tpu.memory_space<vmem>>, vector<1x128xf32>
    %14 = arith.truncf %11 : vector<8x128xf32> to vector<8x128xbf16>
    %cst_11 = arith.constant dense<0.000000e+00> : vector<8x128xf32>
    %15 = tpu.matmul %14, %12, %cst_11 {dimension_numbers = #tpu.dot_dimension_numbers<[1], [0], [0], [1], [0, 0, 1, 1], [], []>} : vector<8x128xbf16>, vector<128x128xbf16>, vector<8x128xf32> -> vector<8x128xf32>
    %16 = vector.broadcast %13 : vector<1x128xf32> to vector<8x128xf32>
    %17 = arith.addf %15, %16 : vector<8x128xf32>
    %18 = math.tanh %17 : vector<8x128xf32>
    %c0_12 = arith.constant 0 : index
    %c0_13 = arith.constant 0 : index
    %19 = vector.load %arg10[%c0_12, %c0_13] : memref<8x128xf32, #tpu.memory_space<vmem>>, vector<8x128xf32>
    tpu.vector_store %arg10[%c0_12, %c0_13], %18 {strides = array<i32>} : memref<8x128xf32, #tpu.memory_space<vmem>>, vector<8x128xf32>,
    %c0_14 = arith.constant 0 : index
    %c0_15 = arith.constant 0 : index
    %20 = vector.load %arg6[%c0_14, %c0_15] : memref<128x128xbf16, #tpu.memory_space<vmem>>, vector<128x128xbf16>
    %c0_16 = arith.constant 0 : index
    %c0_17 = arith.constant 0 : index
    %21 = vector.load %arg7[%c0_16, %c0_17] : memref<1x128xf32, #tpu.memory_space<vmem>>, vector<1x128xf32>
    %22 = arith.truncf %18 : vector<8x128xf32> to vector<8x128xbf16>
    %cst_18 = arith.constant dense<0.000000e+00> : vector<8x128xf32>
    %23 = tpu.matmul %22, %20, %cst_18 {dimension_numbers = #tpu.dot_dimension_numbers<[1], [0], [0], [1], [0, 0, 1, 1], [], []>} : vector<8x128xbf16>, vector<128x128xbf16>, vector<8x128xf32> -> vector<8x128xf32>
    %24 = vector.broadcast %21 : vector<1x128xf32> to vector<8x128xf32>
    %25 = arith.addf %23, %24 : vector<8x128xf32>
    %cst_19 = arith.constant 0.000000e+00 : f32
    %26 = vector.broadcast %cst_19 : f32 to vector<8x128xf32>
    %27 = arith.cmpf oge, %25, %26 : vector<8x128xf32>
    %cst_20 = arith.constant 2.000000e-01 : f32
    %28 = vector.broadcast %cst_20 : f32 to vector<8x128xf32>
    %29 = arith.mulf %28, %25 : vector<8x128xf32>
    %30 = arith.select %27, %25, %29 : vector<8x128xi1>, vector<8x128xf32>
    %c0_21 = arith.constant 0 : index
    %c0_22 = arith.constant 0 : index
    %31 = vector.load %arg8[%c0_21, %c0_22] : memref<128x128xbf16, #tpu.memory_space<vmem>>, vector<128x128xbf16>
    %c0_23 = arith.constant 0 : index
    %c0_24 = arith.constant 0 : index
    %32 = vector.load %arg9[%c0_23, %c0_24] : memref<1x128xf32, #tpu.memory_space<vmem>>, vector<1x128xf32>
    %33 = arith.truncf %30 : vector<8x128xf32> to vector<8x128xbf16>
    %cst_25 = arith.constant dense<0.000000e+00> : vector<8x128xf32>
    %34 = tpu.matmul %33, %31, %cst_25 {dimension_numbers = #tpu.dot_dimension_numbers<[1], [0], [0], [1], [0, 0, 1, 1], [], []>} : vector<8x128xbf16>, vector<128x128xbf16>, vector<8x128xf32> -> vector<8x128xf32>
    %35 = vector.broadcast %32 : vector<1x128xf32> to vector<8x128xf32>
    %36 = arith.addf %34, %35 : vector<8x128xf32>
    %37 = arith.negf %36 : vector<8x128xf32>
    %38 = math.exp %37 : vector<8x128xf32>
    %cst_26 = arith.constant 1.000000e+00 : f32
    %39 = vector.broadcast %cst_26 : f32 to vector<8x128xf32>
    %40 = arith.addf %39, %38 : vector<8x128xf32>
    %41 = arith.divf %39, %40 : vector<8x128xf32>
    %c0_27 = arith.constant 0 : index
    %c0_28 = arith.constant 0 : index
    %42 = vector.load %arg11[%c0_27, %c0_28] : memref<8x128xf32, #tpu.memory_space<vmem>>, vector<8x128xf32>
    tpu.vector_store %arg11[%c0_27, %c0_28], %41 {strides = array<i32>} : memref<8x128xf32, #tpu.memory_space<vmem>>, vector<8x128xf32>,
    return
  }
  func.func @transform_0(%arg0: i32) -> (i32, i32) {
    %c0_i32 = arith.constant 0 : i32
    %c0_i32_0 = arith.constant 0 : i32
    return %arg0, %c0_i32 : i32, i32
  }
  func.func @transform_1(%arg0: i32) -> (i32, i32) {
    %c0_i32 = arith.constant 0 : i32
    %c0_i32_0 = arith.constant 0 : i32
    %c0_i32_1 = arith.constant 0 : i32
    return %c0_i32, %c0_i32_0 : i32, i32
  }
  func.func @transform_2(%arg0: i32) -> (i32, i32) {
    %c0_i32 = arith.constant 0 : i32
    %c0_i32_0 = arith.constant 0 : i32
    %c0_i32_1 = arith.constant 0 : i32
    return %c0_i32, %c0_i32_0 : i32, i32
  }
  func.func @transform_3(%arg0: i32) -> (i32, i32) {
    %c0_i32 = arith.constant 0 : i32
    %c0_i32_0 = arith.constant 0 : i32
    %c0_i32_1 = arith.constant 0 : i32
    return %c0_i32, %c0_i32_0 : i32, i32
  }
  func.func @transform_4(%arg0: i32) -> (i32, i32) {
    %c0_i32 = arith.constant 0 : i32
    %c0_i32_0 = arith.constant 0 : i32
    %c0_i32_1 = arith.constant 0 : i32
    return %c0_i32, %c0_i32_0 : i32, i32
  }
  func.func @transform_5(%arg0: i32) -> (i32, i32) {
    %c0_i32 = arith.constant 0 : i32
    %c0_i32_0 = arith.constant 0 : i32
    %c0_i32_1 = arith.constant 0 : i32
    return %c0_i32, %c0_i32_0 : i32, i32
  }
  func.func @transform_6(%arg0: i32) -> (i32, i32) {
    %c0_i32 = arith.constant 0 : i32
    %c0_i32_0 = arith.constant 0 : i32
    %c0_i32_1 = arith.constant 0 : i32
    return %c0_i32, %c0_i32_0 : i32, i32
  }
  func.func @transform_7(%arg0: i32) -> (i32, i32) {
    %c0_i32 = arith.constant 0 : i32
    %c0_i32_0 = arith.constant 0 : i32
    %c0_i32_1 = arith.constant 0 : i32
    return %c0_i32, %c0_i32_0 : i32, i32
  }
  func.func @transform_8(%arg0: i32) -> (i32, i32) {
    %c0_i32 = arith.constant 0 : i32
    %c0_i32_0 = arith.constant 0 : i32
    %c0_i32_1 = arith.constant 0 : i32
    return %c0_i32, %c0_i32_0 : i32, i32
  }
  func.func @transform_9(%arg0: i32) -> (i32, i32) {
    %c0_i32 = arith.constant 0 : i32
    %c0_i32_0 = arith.constant 0 : i32
    return %arg0, %c0_i32 : i32, i32
  }
  func.func @transform_10(%arg0: i32) -> (i32, i32) {
    %c0_i32 = arith.constant 0 : i32
    %c0_i32_0 = arith.constant 0 : i32
    return %arg0, %c0_i32 : i32, i32
  }
}

</mosaic_0001>

<bundles_post_ra>
// kernel: _fwd.1
= control target key start
LH: loop header
LB: loop body
LE: loop exit
PB: predicated region body
PF: predicated region fallthrough
CT: control target
= control target key end

     0   :  { %16 = vsyncpa [#allocation3], 0  ;;  %s1056_s0 = inlined_call_operand.vmem [shape: f32[8,128], index: 0, kind: input, shape index: {}]   ;;  %s1057_s1 = inlined_call_operand.hbm [shape: bf16[128,128], index: 1, kind: input, shape index: {}]   ;;  %s1058_s2 = inlined_call_operand.vmem [shape: f32[1,128], index: 2, kind: input, shape index: {}]   ;;  %s1059_s3 = inlined_call_operand.hbm [shape: bf16[128,128], index: 3, kind: input, shape index: {}]   ;;  %s1060_s4 = inlined_call_operand.vmem [shape: f32[1,128], index: 4, kind: input, shape index: {}]   ;;  %s1061_s5 = inlined_call_operand.hbm [shape: bf16[128,128], index: 5, kind: input, shape index: {}]   ;;  %s1062_s6 = inlined_call_operand.vmem [shape: f32[1,128], index: 6, kind: input, shape index: {}]   ;;  %s1063_s7 = inlined_call_operand.hbm [shape: bf16[128,128], index: 7, kind: input, shape index: {}]   ;;  %s1064_s8 = inlined_call_operand.vmem [shape: f32[1,128], index: 8, kind: input, shape index: {}]   ;;  %s1065_s9 = inlined_call_operand.vmem [shape: f32[8,128], index: 9, kind: output, shape index: {0}]   ;;  %s1066_s10 = inlined_call_operand.vmem [shape: f32[8,128], index: 10, kind: output, shape index: {1}]  }
   0x1   :  { %17 = vsyncpa [#allocation5], 0 }
   0x2   :  { %18 = vsyncpa [#allocation8], 0  ;;  %s858_s13 = smov [#allocation4]   ;;  %s859_s15 = smov [#allocation2]  }
   0x3   :  { %s40_s14 = sshll.u32 %s858_s13, 4  ;;  %s26_s16 = sshll.u32 %s859_s15, 4  ;;  %s41_s14 = int_to_ptr.vmem [resolvable:$true] %s40_s14  ;;  %s921_s16 = int_to_ptr.vmem [resolvable:$true] %s26_s16 }
   0x4   :  { %s764_s19 = scalar_lea.hbm %s1059_s3, 1024 }
   0x5   :  { %p765_p0 = scmp.ne.s32.totalorder %s1059_s3, %s764_s19  ;;  %p768_p1 = scmp.lt.u32.totalorder %s764_s19, %s1059_s3 }
   0x7   :  { %p770_p2 = pnand %p768_p1, %p765_p0 }
   0x9   :  { %773 = shalt.err (!%p770_p2)
}
   0xa   :  { %s774_s24 = scalar_lea.vmem %s41_s14, 1024  ;;  %p779_p4 = scmp.lt.s32.totalorder %s41_s14, %s41_s14 }
   0xb   :  { %p775_p3 = scmp.ne.s32.totalorder %s41_s14, %s774_s24  ;;  %p780_p5 = scmp.lt.s32.totalorder %s774_s24, %s774_s24 }
   0xd   :  { %p781_p6 = por %p780_p5, %p779_p4 }
   0xf   :  { %p782_p7 = pnand %p781_p6, %p775_p3 }
  0x11   :  { %785 = shalt.err (!%p782_p7)
}
  0x12   :  { %s860_s25 = smov 64   ;;  %s861_s26 = smov 4  }
  0x13   :  { %46 = dma.hbm_to_vmem [thread:$0]  %s1059_s3, 1024, %s41_s14, [#allocation5], %s860_s25, %s860_s25, %s861_s26  }
  0x14   :  { %s786_s11 = scalar_lea.hbm %s1057_s1, 1024 }
  0x15   :  { %p787_p8 = scmp.ne.s32.totalorder %s1057_s1, %s786_s11  ;;  %p790_p9 = scmp.lt.u32.totalorder %s786_s11, %s1057_s1 }
  0x17   :  { %p792_p10 = pnand %p790_p9, %p787_p8 }
  0x19   :  { %795 = shalt.err (!%p792_p10)
}
  0x1a   :  { %s796_s18 = scalar_lea.vmem %s921_s16, 1024  ;;  %p801_p12 = scmp.lt.s32.totalorder %s921_s16, %s921_s16 }
  0x1b   :  { %p797_p11 = scmp.ne.s32.totalorder %s921_s16, %s796_s18  ;;  %p802_p13 = scmp.lt.s32.totalorder %s796_s18, %s796_s18 }
  0x1d   :  { %p803_p0 = por %p802_p13, %p801_p12 }
  0x1f   :  { %p804_p1 = pnand %p803_p0, %p797_p11 }
  0x21   :  { %807 = shalt.err (!%p804_p1)
}
  0x22   :  { %32 = dma.hbm_to_vmem [thread:$0]  %s1057_s1, 1024, %s921_s16, [#allocation3], %s860_s25, %s860_s25, %s861_s26  }
  0x23   :  { %s862_s19 = smov [#allocation6]   ;;  %s863_s21 = smov [#allocation7]  }
  0x24   :  { %s54_s20 = sshll.u32 %s862_s19, 4  ;;  %s68_s22 = sshll.u32 %s863_s21, 4  ;;  %s55_s20 = int_to_ptr.vmem [resolvable:$true] %s54_s20  ;;  %s958_s22 = int_to_ptr.vmem [resolvable:$true] %s68_s22 }
  0x25   :  { %s808_s27 = scalar_lea.hbm %s1061_s5, 1024 }
  0x26   :  { %p809_p2 = scmp.ne.s32.totalorder %s1061_s5, %s808_s27  ;;  %p812_p3 = scmp.lt.u32.totalorder %s808_s27, %s1061_s5 }
  0x28   :  { %p814_p4 = pnand %p812_p3, %p809_p2 }
  0x2a   :  { %817 = shalt.err (!%p814_p4)
}
  0x2b   :  { %s818_s1 = scalar_lea.vmem %s55_s20, 1024  ;;  %p823_p6 = scmp.lt.s32.totalorder %s55_s20, %s55_s20 }
  0x2c   :  { %p819_p5 = scmp.ne.s32.totalorder %s55_s20, %s818_s1  ;;  %p824_p7 = scmp.lt.s32.totalorder %s818_s1, %s818_s1 }
  0x2e   :  { %p825_p8 = por %p824_p7, %p823_p6 }
  0x30   :  { %p826_p9 = pnand %p825_p8, %p819_p5 }
  0x32   :  { %829 = shalt.err (!%p826_p9)
}
  0x33   :  { %60 = dma.hbm_to_vmem [thread:$0]  %s1061_s5, 1024, %s55_s20, [#allocation5], %s860_s25, %s860_s25, %s861_s26  }
  0x34   :  { %s830_s17 = scalar_lea.hbm %s1063_s7, 1024 }
  0x35   :  { %p831_p10 = scmp.ne.s32.totalorder %s1063_s7, %s830_s17  ;;  %p834_p11 = scmp.lt.u32.totalorder %s830_s17, %s1063_s7 }
  0x37   :  { %p836_p12 = pnand %p834_p11, %p831_p10 }
  0x39   :  { %839 = shalt.err (!%p836_p12)
}
  0x3a   :  { %s840_s21 = scalar_lea.vmem %s958_s22, 1024  ;;  %p845_p0 = scmp.lt.s32.totalorder %s958_s22, %s958_s22 }
  0x3b   :  { %p841_p13 = scmp.ne.s32.totalorder %s958_s22, %s840_s21  ;;  %p846_p1 = scmp.lt.s32.totalorder %s840_s21, %s840_s21 }
  0x3d   :  { %p847_p2 = por %p846_p1, %p845_p0 }
  0x3f   :  { %p848_p3 = pnand %p847_p2, %p841_p13 }
  0x41   :  { %851 = shalt.err (!%p848_p3)
}
  0x42   :  { %74 = dma.hbm_to_vmem [thread:$0]  %s1063_s7, 1024, %s958_s22, [#allocation8], %s860_s25, %s860_s25, %s861_s26  }
  0x43   :  { %852 = dma.done.wait [#allocation3], 1024  }
  0x44   :  { %853 = vsyncadd [#allocation3], 4294966272 }
  0x45   :  { %854 = dma.done.wait [#allocation5], 2048  }
  0x46   :  { %855 = vsyncadd [#allocation5], 4294965248 }
  0x47   :  { %856 = dma.done.wait [#allocation8], 1024  }
  0x48   :  { %857 = vsyncadd [#allocation8], 4294966272  ;;  %v864_v0 = vmov 0.0   ;;  %vm865_vm0 = vmmov 0   ;;  %v726_v1 = vld [vmem:[#allocation2] sm:$0xff]   ;;  %v727_v2 = vld [vmem:[#allocation2 + $0x8] sm:$0xff]  }
  0x49   :  { %638 = vmatprep.subr.bf16.mxu0 %v864_v0  ;;  %654 = vmatprep.mubr.msk.bf16.mxu0 %vm865_vm0, %v864_v0  ;;  %v728_v3 = vld [vmem:[#allocation2 + $0x10] sm:$0xff]   ;;  %v734_v4 = vld [vmem:[#allocation4] sm:$0xff]   ;;  %v729_v5 = vld [vmem:[#allocation2 + $0x18] sm:$0xff]  }
  0x4a   :  { %658 = vmatprep.subr.bf16.mxu1 %v864_v0  ;;  %674 = vmatprep.mubr.msk.bf16.mxu1 %vm865_vm0, %v864_v0  ;;  %v735_v6 = vld [vmem:[#allocation4 + $0x8] sm:$0xff]   ;;  %v730_v7 = vld [vmem:[#allocation2 + $0x20] sm:$0xff]   ;;  %v736_v8 = vld [vmem:[#allocation4 + $0x10] sm:$0xff]  }
  0x4b   :  { %639 = vmatpush3.bf16.msra.mxu0 %v726_v1  ;;  %659 = vmatpush3.bf16.msra.mxu1 %v734_v4  ;;  %v731_v9 = vld [vmem:[#allocation2 + $0x28] sm:$0xff]   ;;  %v737_v10 = vld [vmem:[#allocation4 + $0x18] sm:$0xff]   ;;  %v732_v11 = vld [vmem:[#allocation2 + $0x30] sm:$0xff]  }
  0x4c   :  { %640 = vmatprep.subr.bf16.mxu0 %v864_v0  ;;  %660 = vmatprep.subr.bf16.mxu1 %v864_v0  ;;  %v738_v12 = vld [vmem:[#allocation4 + $0x20] sm:$0xff]   ;;  %v733_v13 = vld [vmem:[#allocation2 + $0x38] sm:$0xff]   ;;  %v739_v15 = vld [vmem:[#allocation4 + $0x28] sm:$0xff]  }
  0x4d   :  { %v90_v14 = vld [vmem:[%s1056_s0] sm:$0xff]  ;;  %v740_v17 = vld [vmem:[#allocation4 + $0x30] sm:$0xff]   ;;  %v741_v18 = vld [vmem:[#allocation4 + $0x38] sm:$0xff]  }
  0x4e   :  { %v108_v16 = vpack.c.bf16 %v90_v14, %v90_v14  ;;  %v742_v19 = vld [vmem:[#allocation6] sm:$0xff]   ;;  %v743_v20 = vld [vmem:[#allocation6 + $0x8] sm:$0xff]   ;;  %v744_v21 = vld [vmem:[#allocation6 + $0x10] sm:$0xff]  }
  0x4f   :  { %641 = vmatpush3.bf16.msra.mxu0 %v727_v2  ;;  %661 = vmatpush3.bf16.msra.mxu1 %v735_v6  ;;  %v745_v22 = vld [vmem:[#allocation6 + $0x18] sm:$0xff]   ;;  %v565_v23 = vld [vmem:[%s1058_s2] ss:$0 sm:$0xff]  ;;  %v747_v33 = vld [vmem:[#allocation6 + $0x28] sm:$0xff]  }
  0x50   :  { %642 = vmatprep.subr.bf16.mxu0 %v864_v0  ;;  %662 = vmatprep.subr.bf16.mxu1 %v864_v0  ;;  %v746_v32 = vld [vmem:[#allocation6 + $0x20] sm:$0xff]   ;;  %v748_v34 = vld [vmem:[#allocation6 + $0x30] sm:$0xff]   ;;  %v749_v35 = vld [vmem:[#allocation6 + $0x38] sm:$0xff]  }
  0x51   :  { %v750_v36 = vld [vmem:[#allocation7] sm:$0xff]   ;;  %v751_v37 = vld [vmem:[#allocation7 + $0x8] sm:$0xff]   ;;  %v752_v38 = vld [vmem:[#allocation7 + $0x10] sm:$0xff]  }
  0x52   :  { %v753_v39 = vld [vmem:[#allocation7 + $0x18] sm:$0xff]   ;;  %v754_v40 = vld [vmem:[#allocation7 + $0x20] sm:$0xff]   ;;  %v755_v41 = vld [vmem:[#allocation7 + $0x28] sm:$0xff]  }
  0x53   :  { %643 = vmatpush3.bf16.msra.mxu0 %v728_v3  ;;  %663 = vmatpush3.bf16.msra.mxu1 %v736_v8  ;;  %v574_v42 = vld [vmem:[%s1060_s4] ss:$0 sm:$0xff]  ;;  %v756_v50 = vld [vmem:[#allocation7 + $0x30] sm:$0xff]   ;;  %v757_v51 = vld [vmem:[#allocation7 + $0x38] sm:$0xff]  }
  0x54   :  { %644 = vmatprep.subr.bf16.mxu0 %v864_v0  ;;  %664 = vmatprep.subr.bf16.mxu1 %v864_v0  ;;  %v583_v52 = vld [vmem:[%s1062_s6] ss:$0 sm:$0xff] }
  0x55   :  { %v592_v61 = vld [vmem:[%s1064_s8] ss:$0 sm:$0xff] }
  0x57   :  { %645 = vmatpush3.bf16.msra.mxu0 %v729_v5  ;;  %665 = vmatpush3.bf16.msra.mxu1 %v737_v10 }
  0x58   :  { %646 = vmatprep.subr.bf16.mxu0 %v864_v0  ;;  %666 = vmatprep.subr.bf16.mxu1 %v864_v0 }
  0x5b   :  { %647 = vmatpush3.bf16.msra.mxu0 %v730_v7  ;;  %667 = vmatpush3.bf16.msra.mxu1 %v738_v12 }
  0x5c   :  { %648 = vmatprep.subr.bf16.mxu0 %v864_v0  ;;  %668 = vmatprep.subr.bf16.mxu1 %v864_v0 }
  0x5f   :  { %649 = vmatpush3.bf16.msra.mxu0 %v731_v9  ;;  %669 = vmatpush3.bf16.msra.mxu1 %v739_v15 }
  0x60   :  { %650 = vmatprep.subr.bf16.mxu0 %v864_v0  ;;  %670 = vmatprep.subr.bf16.mxu1 %v864_v0 }
  0x63   :  { %651 = vmatpush3.bf16.msra.mxu0 %v732_v11  ;;  %671 = vmatpush3.bf16.msra.mxu1 %v740_v17 }
  0x64   :  { %652 = vmatprep.subr.bf16.mxu0 %v864_v0  ;;  %672 = vmatprep.subr.bf16.mxu1 %v864_v0 }
  0x67   :  { %653 = vmatpush3.bf16.msra.mxu0 %v733_v13  ;;  %673 = vmatpush3.bf16.msra.mxu1 %v741_v18 }
  0x68   :  { %678 = vmatprep.subr.bf16.mxu0 %v864_v0  ;;  %698 = vmatprep.subr.bf16.mxu1 %v864_v0 }
  0x6a   :  { %655 = vmatmul.mubr.bf16.vlgmr.msra.gmra.mrb[0].mxu0 %v108_v16 }
  0x6b   :  { %694 = vmatprep.mubr.msk.bf16.mxu0 %vm865_vm0, %v864_v0  ;;  %679 = vmatpush3.bf16.msra.mxu0 %v742_v19 }
  0x6c   :  { %680 = vmatprep.subr.bf16.mxu0 %v864_v0 }
  0x6f   :  { %681 = vmatpush3.bf16.msra.mxu0 %v743_v20 }
  0x70   :  { %682 = vmatprep.subr.bf16.mxu0 %v864_v0 }
  0x73   :  { %683 = vmatpush3.bf16.msra.mxu0 %v744_v21 }
  0x74   :  { %684 = vmatprep.subr.bf16.mxu0 %v864_v0 }
  0x77   :  { %685 = vmatpush3.bf16.msra.mxu0 %v745_v22 }
  0x78   :  { %686 = vmatprep.subr.bf16.mxu0 %v864_v0 }
  0x7b   :  { %687 = vmatpush3.bf16.msra.mxu0 %v746_v32 }
  0x7c   :  { %688 = vmatprep.subr.bf16.mxu0 %v864_v0 }
  0x7f   :  { %689 = vmatpush3.bf16.msra.mxu0 %v747_v33 }
  0x80   :  { %690 = vmatprep.subr.bf16.mxu0 %v864_v0 }
  0x83   :  { %691 = vmatpush3.bf16.msra.mxu0 %v748_v34 }
  0x84   :  { %692 = vmatprep.subr.bf16.mxu0 %v864_v0 }
  0x87   :  { %693 = vmatpush3.bf16.msra.mxu0 %v749_v35 }
 0x13d   :  { %v197_v24 = vpop.f32.mrb[0].mxu0 }
 0x13e   :  { %v198_v25 = vadd.f32 %v565_v23, %v197_v24  ;;  %v656_v26 = vpop.f32.mrb[1].mxu0 }
 0x13f   :  { %v200_v27 = vpop.f32.mrb[2].mxu0 }
 0x140   :  { %vm203_vm1 = vcmp.ge.f32.partialorder %v198_v25, 0.0  ;;  %v204_v28 = vmul.f32 0.2, %v198_v25  ;;  %v657_v29 = vpop.f32.mrb[3].mxu0 }
 0x142   :  { %v205_v30 = vsel %vm203_vm1, %v198_v25, %v204_v28 }
 0x143   :  { %v223_v31 = vpack.c.bf16 %v205_v30, %v205_v30 }
 0x145   :  { %675 = vmatmul.mubr.bf16.vlgmr.msra.gmra.mrb[0].mxu1 %v223_v31 }
 0x146   :  { %714 = vmatprep.mubr.msk.bf16.mxu1 %vm865_vm0, %v864_v0  ;;  %699 = vmatpush3.bf16.msra.mxu1 %v750_v36 }
 0x147   :  { %700 = vmatprep.subr.bf16.mxu1 %v864_v0 }
 0x14a   :  { %701 = vmatpush3.bf16.msra.mxu1 %v751_v37 }
 0x14b   :  { %702 = vmatprep.subr.bf16.mxu1 %v864_v0 }
 0x14e   :  { %703 = vmatpush3.bf16.msra.mxu1 %v752_v38 }
 0x14f   :  { %704 = vmatprep.subr.bf16.mxu1 %v864_v0 }
 0x152   :  { %705 = vmatpush3.bf16.msra.mxu1 %v753_v39 }
 0x153   :  { %706 = vmatprep.subr.bf16.mxu1 %v864_v0 }
 0x156   :  { %707 = vmatpush3.bf16.msra.mxu1 %v754_v40 }
 0x157   :  { %708 = vmatprep.subr.bf16.mxu1 %v864_v0 }
 0x15a   :  { %709 = vmatpush3.bf16.msra.mxu1 %v755_v41 }
 0x15b   :  { %710 = vmatprep.subr.bf16.mxu1 %v864_v0 }
 0x15e   :  { %711 = vmatpush3.bf16.msra.mxu1 %v756_v50 }
 0x15f   :  { %712 = vmatprep.subr.bf16.mxu1 %v864_v0 }
 0x162   :  { %713 = vmatpush3.bf16.msra.mxu1 %v757_v51 }
 0x218   :  { %v312_v43 = vpop.f32.mrb[0].mxu1 }
 0x219   :  { %v313_v44 = vadd.f32 %v574_v42, %v312_v43  ;;  %v676_v45 = vpop.f32.mrb[1].mxu1 }
 0x21a   :  { %v315_v46 = vpop.f32.mrb[2].mxu1 }
 0x21b   :  { %758 = vtanh.f32 %v313_v44  ;;  %v677_v47 = vpop.f32.mrb[3].mxu1 }
 0x225   :  { %v759_v48 = vpop.eup %758 }
 0x226   :  { %319 = vst [vmem:[%s1065_s9] sm:$0xff] %v759_v48  ;;  %v337_v49 = vpack.c.bf16 %v759_v48, %v759_v48 }
 0x228   :  { %695 = vmatmul.mubr.bf16.vlgmr.msra.gmra.mrb[4].mxu0 %v337_v49 }
 0x2fb   :  { %v426_v53 = vpop.f32.mrb[4].mxu0 }
 0x2fc   :  { %v427_v54 = vadd.f32 %v583_v52, %v426_v53  ;;  %v696_v55 = vpop.f32.mrb[5].mxu0 }
 0x2fd   :  { %v429_v56 = vpop.f32.mrb[6].mxu0 }
 0x2fe   :  { %vm432_vm2 = vcmp.ge.f32.partialorder %v427_v54, 0.0  ;;  %v433_v57 = vmul.f32 0.2, %v427_v54  ;;  %v697_v58 = vpop.f32.mrb[7].mxu0 }
 0x300   :  { %v434_v59 = vsel %vm432_vm2, %v427_v54, %v433_v57 }
 0x301   :  { %v452_v60 = vpack.c.bf16 %v434_v59, %v434_v59 }
 0x303   :  { %715 = vmatmul.mubr.bf16.vlgmr.msra.gmra.mrb[4].mxu1 %v452_v60 }
 0x3d6   :  { %v541_v62 = vpop.f32.mrb[4].mxu1 }
 0x3d7   :  { %v542_v63 = vadd.f32 %v592_v61, %v541_v62  ;;  %v716_v0 = vpop.f32.mrb[5].mxu1 }
 0x3d8   :  { %v544_v1 = vpop.f32.mrb[6].mxu1 }
 0x3d9   :  { %v601_v2 = vmul.f32 -1.442695, %v542_v63  ;;  %v717_v3 = vpop.f32.mrb[7].mxu1 }
 0x3db   :  { %760 = vpow2.f32 %v601_v2 }
 0x3e5   :  { %v761_v4 = vpop.eup %760 }
 0x3e6   :  { %v550_v5 = vadd.f32 1.0, %v761_v4 }
 0x3e8   :  { %762 = vrcp.f32 %v550_v5 }
 0x3f2   :  { %v763_v6 = vpop.eup %762 }
 0x3f3   :  { %553 = vst [vmem:[%s1066_s10] sm:$0xff] %v763_v6 }
 0x3f4   :  { %562 = vsyncpa [#allocation3], 1 }
 0x3f5   :  { %563 = vsyncpa [#allocation5], 1 }
 0x3f6   :  { %564 = vsyncpa [#allocation8], 1 }

</bundles_post_ra>
